<compile_context>
chip_gen: v7x
topology: tpu7x:2x2x1
jax: 0.10.0
libtpu: 0.0.40
codegen_flags: <defaults>
</compile_context>

<pallas_src>
import jax
import jax.numpy as jnp
from jax.experimental import pallas as pl
from jax.experimental.pallas import tpu as pltpu


def linear_cat_kernel(x_ref, w_ref, o_ref):
    # x_ref: (B, in_f)              input rows
    # w_ref: (in_f + 1, 2*out_f)    rows 0..in_f-1 = [W^T | W^T], row in_f = tiled bias
    # o_ref: (B, 2*out_f)           output == cat([x@W^T + b, x@W^T + b], -1)
    x = x_ref[...]
    w = w_ref[...]
    in_f = x.shape[1]
    # Seed accumulator from the bias row (broadcasts (1, 2*out_f) -> (B, 2*out_f)).
    y = w[in_f:in_f + 1, :]
    # in_f is tiny (2): unrolled VPU broadcast FMAs — no MXU involvement.
    for k in range(in_f):
        y = y + x[:, k:k + 1] * w[k:k + 1, :]
    o_ref[...] = y.astype(o_ref.dtype)  # single full-block store


def fold_params(weight, bias):
    """One-time setup: fold the concat and the bias into a single slab.

    weight: (out_f, in_f) f32 (PyTorch nn.Linear layout), bias: (out_f,) f32.
    Returns w_aug of shape (in_f + 1, 2*out_f).
    """
    wt = weight.T                                    # (in_f, out_f)
    w_cat = jnp.concatenate([wt, wt], axis=1)        # (in_f, 2*out_f)
    b_cat = jnp.tile(bias, 2)[None, :]               # (1, 2*out_f)
    return jnp.concatenate([w_cat, b_cat], axis=0)   # (in_f + 1, 2*out_f)


@jax.jit
def model_forward(x, w_aug):
    """x: (B, in_f) f32, w_aug: (in_f + 1, 2*out_f) f32 (from fold_params).

    Returns (B, 2*out_f) == torch.cat([x @ W^T + b, x @ W^T + b], dim=-1).
    """
    B, in_f = x.shape
    two_out = w_aug.shape[1]

    itemsize = jnp.dtype(x.dtype).itemsize
    flops = 2 * B * in_f * two_out
    bytes_accessed = (B * in_f + (in_f + 1) * two_out + B * two_out) * itemsize

    vmem = pltpu.MemorySpace.VMEM
    return pl.pallas_call(
        linear_cat_kernel,
        out_shape=jax.ShapeDtypeStruct((B, two_out), x.dtype),
        in_specs=[
            pl.BlockSpec(memory_space=vmem),   # x      (whole array, one block)
            pl.BlockSpec(memory_space=vmem),   # w_aug  (weights + bias, one DMA)
        ],
        out_specs=pl.BlockSpec(memory_space=vmem),
        cost_estimate=pl.CostEstimate(
            flops=flops, transcendentals=0, bytes_accessed=bytes_accessed),
    )(x, w_aug)


if __name__ == "__main__":
    key = jax.random.PRNGKey(0)
    kx, kw, kb = jax.random.split(key, 3)

    # Shapes implied by the module: Linear(2, 2) => in_features = out_features = 2.
    # Batch of 8 rows = one full sublane group (no sub-sublane padding).
    B = 8
    x = jax.random.normal(kx, (B, 2), dtype=jnp.float32)

    # Deterministic parameter init (same shapes as nn.Linear(2, 2)).
    bound = 1.0 / jnp.sqrt(2.0)
    weight = jax.random.uniform(kw, (2, 2), jnp.float32, -bound, bound)
    bias = jax.random.uniform(kb, (2,), jnp.float32, -bound, bound)

    # One-time parameter folding (model-setup time, not per forward call).
    w_aug = jax.block_until_ready(fold_params(weight, bias))

    out = model_forward(x, w_aug)
    out = jax.block_until_ready(out)

    # Reference check in plain JAX.
    y_ref = x @ weight.T + bias
    ref = jnp.concatenate([y_ref, y_ref], axis=-1)
    assert out.shape == (B, 4)
    assert jnp.allclose(out, ref, atol=1e-5, rtol=1e-5)

    print("KERNEL_OK")
</pallas_src>

<mosaic_0001>
module attributes {stable_mosaic.version = 11 : i64} {
  func.func @linear_cat_kernel(%arg0: memref<8x2xf32, #tpu.memory_space<vmem>>, %arg1: memref<3x4xf32, #tpu.memory_space<vmem>>, %arg2: memref<8x4xf32, #tpu.memory_space<vmem>>) attributes {dimension_semantics = [], scalar_prefetch = 0 : i64, scratch_operands = 0 : i64, tpu.core_type = #tpu.core_type<tc>} {
    %c0 = arith.constant 0 : index
    %c0_0 = arith.constant 0 : index
    %0 = vector.load %arg0[%c0, %c0_0] : memref<8x2xf32, #tpu.memory_space<vmem>>, vector<8x2xf32>
    %c0_1 = arith.constant 0 : index
    %c0_2 = arith.constant 0 : index
    %1 = vector.load %arg1[%c0_1, %c0_2] : memref<3x4xf32, #tpu.memory_space<vmem>>, vector<3x4xf32>
    %2 = vector.extract_strided_slice %1 {offsets = [2, 0], sizes = [1, 4], strides = [1, 1]} : vector<3x4xf32> to vector<1x4xf32>
    %3 = vector.extract_strided_slice %0 {offsets = [0, 0], sizes = [8, 1], strides = [1, 1]} : vector<8x2xf32> to vector<8x1xf32>
    %4 = vector.extract_strided_slice %1 {offsets = [0, 0], sizes = [1, 4], strides = [1, 1]} : vector<3x4xf32> to vector<1x4xf32>
    %5 = vector.broadcast %3 : vector<8x1xf32> to vector<8x4xf32>
    %6 = vector.broadcast %4 : vector<1x4xf32> to vector<8x4xf32>
    %7 = arith.mulf %5, %6 : vector<8x4xf32>
    %8 = vector.broadcast %2 : vector<1x4xf32> to vector<8x4xf32>
    %9 = arith.addf %8, %7 : vector<8x4xf32>
    %10 = vector.extract_strided_slice %0 {offsets = [0, 1], sizes = [8, 1], strides = [1, 1]} : vector<8x2xf32> to vector<8x1xf32>
    %11 = vector.extract_strided_slice %1 {offsets = [1, 0], sizes = [1, 4], strides = [1, 1]} : vector<3x4xf32> to vector<1x4xf32>
    %12 = vector.broadcast %10 : vector<8x1xf32> to vector<8x4xf32>
    %13 = vector.broadcast %11 : vector<1x4xf32> to vector<8x4xf32>
    %14 = arith.mulf %12, %13 : vector<8x4xf32>
    %15 = arith.addf %9, %14 : vector<8x4xf32>
    %c0_3 = arith.constant 0 : index
    %c0_4 = arith.constant 0 : index
    %16 = vector.load %arg2[%c0_3, %c0_4] : memref<8x4xf32, #tpu.memory_space<vmem>>, vector<8x4xf32>
    tpu.vector_store %arg2[%c0_3, %c0_4], %15 {strides = array<i32>} : memref<8x4xf32, #tpu.memory_space<vmem>>, vector<8x4xf32>,
    return
  }
}

</mosaic_0001>

<bundles_post_ra>
// kernel: model_forward.1
= control target key start
LH: loop header
LB: loop body
LE: loop exit
PB: predicated region body
PF: predicated region fallthrough
CT: control target
= control target key end

     0   :  { %v48_v0 = vmov 0   ;;  %v49_v2 = vmov 1   ;;  %v18_v3 = vlaneseq  ;;  %vm38_vm0 = vcmask 31744   ;;  %s74_s0 = inlined_call_operand.vmem [shape: f32[8,2], index: 0, kind: input, shape index: {}]   ;;  %s75_s1 = inlined_call_operand.vmem [shape: f32[3,4], index: 1, kind: input, shape index: {}]   ;;  %s76_s2 = inlined_call_operand.vmem [shape: f32[8,4], index: 2, kind: output, shape index: {}]  }
   0x1   :  { %46 = vset.pattern.permute.xlu0 %v48_v0  ;;  %v11_v1 = vld [vmem:[%s74_s0] sm:$0xff] }
   0x2   :  { %15 = vperm.xlu0 %46, %v11_v1   ;;  %v19_v4 = vshrl.u32 %v18_v3, 7  ;;  %v12_v6 = vld [vmem:[%s75_s1] sm:$0x7] }
   0x4   :  { %v20_v5 = vsub.s32 0, %v19_v4  ;;  %v25_v8 = vsub.s32 2, %v19_v4  ;;  %v34_v9 = vsub.s32 1, %v19_v4 }
   0x6   :  { %47 = vset.pattern.permute.xlu0 %v49_v2  ;;  %v21_v7 = vrot.slane %v12_v6, %v20_v5  ;;  %v26_v11 = vrot.slane %v12_v6, %v25_v8  ;;  %v35_v13 = vrot.slane %v12_v6, %v34_v9 }
   0x7   :  { %29 = vperm.xlu0 %47, %v11_v1  }
  0x81   :  { %v16_v10 = vpop.permute.xlu0 %15 }
  0x82   :  { %v22_v12 = vmul.f32 %v21_v7, %v16_v10 }
  0x84   :  { %v27_v15 = vadd.f32 %v26_v11, %v22_v12 }
  0x86   :  { %v30_v14 = vpop.permute.xlu0 %29 }
  0x87   :  { %v36_v16 = vmul.f32 %v35_v13, %v30_v14 }
  0x89   :  { %v37_v17 = vadd.f32 %v36_v16, %v27_v15 }
  0x8b   :  { %39 = vst.msk [vmem:[%s76_s2] sm:$0xff] %vm38_vm0, %v37_v17 }

</bundles_post_ra>
